<compile_context>
chip_gen: v7x
topology: tpu7x:2x2x1
jax: 0.10.0
libtpu: 0.0.40
codegen_flags: <defaults>
</compile_context>

<pallas_src>
import functools

import jax
import jax.numpy as jnp
from jax.experimental import pallas as pl
from jax.experimental.pallas import tpu as pltpu


def _softmax_ce_kernel(y_ref, o_ref, acc_ref, *, batch_size, tile_b,
                       tiles_per_split, exp_in_bf16):
    p = pl.program_id(0)          # split (sharded across TCs where supported)
    j = pl.program_id(1)          # batch-tile index within the split

    @pl.when(j == 0)
    def _init():
        acc_ref[...] = jnp.zeros_like(acc_ref)

    x = y_ref[...].astype(jnp.float32)                        # (tile_b, C)
    n_cls = x.shape[1]
    m = jnp.max(x, axis=1, keepdims=True)                     # (tile_b, 1) XLU
    xm = x - m
    if exp_in_bf16:
        pexp = jnp.exp(xm.astype(jnp.bfloat16))               # EUP bf16
    else:
        pexp = jnp.exp(xm)                                     # EUP f32
    # Row-wise sum(exp) on the otherwise-idle MXU instead of the XLU.
    ones_col = jnp.ones((n_cls, 1), pexp.dtype)
    sumexp = jnp.dot(pexp, ones_col,
                     preferred_element_type=jnp.float32)       # (tile_b, 1)
    lse = jnp.log(sumexp) + m                                  # (tile_b, 1)
    # -log(softmax(x)[:, 0]) = logsumexp(x) - x[:, 0]
    row_loss = lse - x[:, 0:1]                                 # (tile_b, 1)

    # Mask rows beyond the true batch (tail of a partial block or a clamped
    # duplicate block); they must contribute exactly 0.
    row_base = (p * tiles_per_split + j) * tile_b
    row_idx = row_base + jax.lax.broadcasted_iota(jnp.int32, (tile_b, 1), 0)
    row_loss = jnp.where(row_idx < batch_size, row_loss, 0.0)

    # Single-vreg accumulator: fold the (tile_b, 128) lane-broadcast losses
    # into (8, 128) with a pure-VPU add-tree (reshape lands on vreg
    # boundaries), then accumulate. No per-step XLU reduce, no big RMW.
    contrib = jnp.broadcast_to(row_loss, (tile_b, 128))
    acc_ref[...] += jnp.sum(contrib.reshape(tile_b // 8, 8, 128), axis=0)

    @pl.when(j == pl.num_programs(1) - 1)
    def _finalize():
        # Single cross-sublane reduction per split; every lane then holds this
        # split's total row-loss sum. Write a dense (1, 8, 128) block.
        split_total = jnp.sum(acc_ref[...], axis=0, keepdims=True)   # (1, 128)
        o_ref[...] = jnp.broadcast_to(split_total[:, None, :], o_ref.shape)


def _vmem_capacity_bytes():
    try:
        return int(pltpu.get_tpu_info().vmem_capacity_bytes)
    except Exception:
        return 64 * 1024 * 1024          # conservative (v7x per-TC)


def _num_tensorcores():
    """2 on parts with two TensorCores per device (v4 / v5p / v7x), else 1."""
    try:
        dk = jax.devices()[0].device_kind.lower()
    except Exception:
        return 1
    if any(tag in dk for tag in ("v4", "v5p", "v7", "7x")):
        return 2
    return 1


def _round_up(x, m):
    return ((x + m - 1) // m) * m


def _pick_tile_b(n_rows, n_cols, itemsize, budget_bytes, capacity_bytes):
    """Largest sublane-aligned batch tile whose footprint fits the budget."""
    # Per-row VMEM: double-buffered input block + in-kernel f32 temporaries
    # (x upcast, x - m, exp(x - m)).
    per_row = 2 * n_cols * itemsize + 3 * n_cols * 4
    by_budget = max(8, (budget_bytes - (1 << 20)) // per_row)
    # Per-buffer input-block byte target: ~8 MiB on 128-MiB parts, ~4 MiB on
    # v7x (64 MiB) / unknown.
    target_block = (8 << 20) if capacity_bytes > (80 << 20) else (4 << 20)
    by_target = max(8, target_block // max(n_cols * itemsize, 1))
    t = min(by_budget, by_target, _round_up(n_rows, 8))
    return max(8, (t // 8) * 8)


def softmax_cross_entropy_loss(y_pred, y_true=None, *, tile_b=None,
                               exp_in_bf16=False):
    """Pallas implementation of SoftmaxCrossEntropyLoss.forward.

    y_pred: (B, C) logits (f32 or bf16). y_true is ignored (as in the module).
    Returns a scalar float32 loss.
    """
    B, C = y_pred.shape
    itemsize = jnp.dtype(y_pred.dtype).itemsize

    capacity = _vmem_capacity_bytes()
    budget = int(capacity * 0.70)
    vmem_limit = int(capacity * 0.75)

    if tile_b is None:
        tile_b = _pick_tile_b(B, C, itemsize, budget, capacity)
    else:
        tile_b = max(8, (int(tile_b) // 8) * 8)
        tile_b = min(tile_b, _round_up(B, 8))

    n_tiles = pl.cdiv(B, tile_b)
    n_splits = 2 if (_num_tensorcores() >= 2 and n_tiles >= 2) else 1
    tiles_per_split = (n_tiles + n_splits - 1) // n_splits
    last_block = n_tiles - 1

    if n_splits * tiles_per_split == n_tiles:
        def in_index(p, j):
            return (p * tiles_per_split + j, 0)
    else:
        # Padded grid: clamp out-of-range block indices to the last valid
        # block; their contributions are fully masked out in the kernel.
        def in_index(p, j):
            return (jnp.minimum(p * tiles_per_split + j, last_block), 0)

    kernel = functools.partial(
        _softmax_ce_kernel,
        batch_size=B,
        tile_b=tile_b,
        tiles_per_split=tiles_per_split,
        exp_in_bf16=exp_in_bf16,
    )

    out = pl.pallas_call(
        kernel,
        out_shape=jax.ShapeDtypeStruct((n_splits, 8, 128), jnp.float32),
        grid_spec=pltpu.PrefetchScalarGridSpec(
            num_scalar_prefetch=0,
            grid=(n_splits, tiles_per_split),
            in_specs=[pl.BlockSpec((tile_b, C), in_index)],
            out_specs=pl.BlockSpec((1, 8, 128), lambda p, j: (p, 0, 0)),
            scratch_shapes=[pltpu.VMEM((8, 128), jnp.float32)],
        ),
        compiler_params=pltpu.CompilerParams(
            dimension_semantics=("parallel", "arbitrary"),
            vmem_limit_bytes=vmem_limit,
        ),
    )(y_pred)

    partials = out[:, 0, 0]                      # one total per split
    return jnp.sum(partials) / jnp.float32(B)


if __name__ == "__main__":
    key = jax.random.PRNGKey(0)
    k1, k2, k3, k4 = jax.random.split(key, 4)

    def ref_loss(y):
        x = y.astype(jnp.float32)
        probs = jax.nn.softmax(x, axis=1)
        return -jnp.mean(jnp.log(probs[:, 0]))

    # Case 1: small single-tile shape (as the module's interface implies).
    B, C = 16, 32
    y_pred = jax.random.normal(k1, (B, C), dtype=jnp.float32)
    y_true = jax.random.randint(k2, (B,), 0, C, dtype=jnp.int32)  # unused by fwd
    loss = jax.block_until_ready(softmax_cross_entropy_loss(y_pred, y_true))
    r = ref_loss(y_pred)
    assert jnp.allclose(loss, r, rtol=1e-5, atol=1e-5), (loss, r)

    # Case 2: uneven batch with a forced small tile -> multi-tile grid,
    # (possibly) 2-way split, clamped last block and tail-row masking.
    B2, C2 = 100, 32
    y2 = jax.random.normal(k3, (B2, C2), dtype=jnp.float32)
    loss2 = jax.block_until_ready(softmax_cross_entropy_loss(y2, tile_b=16))
    r2 = ref_loss(y2)
    assert jnp.allclose(loss2, r2, rtol=1e-5, atol=1e-5), (loss2, r2)

    # Case 3: bf16 logits straight from HBM (no upcast before the kernel).
    B3, C3 = 64, 128
    y3 = jax.random.normal(k4, (B3, C3), dtype=jnp.bfloat16)
    loss3 = jax.block_until_ready(softmax_cross_entropy_loss(y3))
    r3 = ref_loss(y3)
    assert jnp.allclose(loss3, r3, rtol=1e-4, atol=1e-4), (loss3, r3)

    print("KERNEL_OK")
</pallas_src>

<mosaic_0001>
module attributes {stable_mosaic.version = 11 : i64} {
  func.func @_softmax_ce_kernel(%arg0: i32, %arg1: i32, %arg2: memref<16x32xf32, #tpu.memory_space<vmem>>, %arg3: memref<1x8x128xf32, #tpu.memory_space<vmem>>, %arg4: memref<8x128xf32, #tpu.memory_space<vmem>>) attributes {dimension_semantics = [#tpu.dimension_semantics<parallel>, #tpu.dimension_semantics<arbitrary>], iteration_bounds = array<i64: 1, 1>, scalar_prefetch = 0 : i64, scratch_operands = 1 : i64, tpu.core_type = #tpu.core_type<tc>, window_params = [{transform_indices = @transform_0, window_bounds = array<i64: 16, 32>}, {transform_indices = @transform_1, window_bounds = array<i64: 1, 8, 128>}]} {
    %c0_i32 = arith.constant 0 : i32
    %0 = arith.cmpi eq, %arg1, %c0_i32 : i32
    %1 = arith.extui %0 : i1 to i32
    %c0_i32_0 = arith.constant 0 : i32
    %2 = arith.cmpi ne, %1, %c0_i32_0 : i32
    scf.if %2 {
      %cst_13 = arith.constant 0.000000e+00 : f32
      %35 = vector.broadcast %cst_13 : f32 to vector<8x128xf32>
      %c0_14 = arith.constant 0 : index
      %c0_15 = arith.constant 0 : index
      %36 = vector.load %arg4[%c0_14, %c0_15] : memref<8x128xf32, #tpu.memory_space<vmem>>, vector<8x128xf32>
      tpu.vector_store %arg4[%c0_14, %c0_15], %35 {strides = array<i32>} : memref<8x128xf32, #tpu.memory_space<vmem>>, vector<8x128xf32>,
    } else {
    }
    %c0 = arith.constant 0 : index
    %c0_1 = arith.constant 0 : index
    %3 = vector.load %arg2[%c0, %c0_1] : memref<16x32xf32, #tpu.memory_space<vmem>>, vector<16x32xf32>
    %cst = arith.constant dense<0xFF800000> : vector<16xf32>
    %4 = vector.multi_reduction <maximumf>, %3, %cst [1] : vector<16x32xf32> to vector<16xf32>
    %5 = vector.shape_cast %4 : vector<16xf32> to vector<16x1xf32>
    %6 = vector.broadcast %5 : vector<16x1xf32> to vector<16x32xf32>
    %7 = arith.subf %3, %6 : vector<16x32xf32>
    %8 = math.exp %7 : vector<16x32xf32>
    %cst_2 = arith.constant 1.000000e+00 : f32
    %9 = vector.broadcast %cst_2 : f32 to vector<32x1xf32>
    %cst_3 = arith.constant dense<0.000000e+00> : vector<16x1xf32>
    %10 = tpu.matmul %8, %9, %cst_3 {dimension_numbers = #tpu.dot_dimension_numbers<[1], [0], [0], [1], [0, 0, 1, 1], [], []>} : vector<16x32xf32>, vector<32x1xf32>, vector<16x1xf32> -> vector<16x1xf32>
    %11 = math.log %10 : vector<16x1xf32>
    %12 = arith.addf %11, %5 : vector<16x1xf32>
    %13 = vector.extract_strided_slice %3 {offsets = [0, 0], sizes = [16, 1], strides = [1, 1]} : vector<16x32xf32> to vector<16x1xf32>
    %14 = arith.subf %12, %13 : vector<16x1xf32>
    %c1_i32 = arith.constant 1 : i32
    %15 = arith.muli %arg0, %c1_i32 : i32
    %16 = arith.addi %15, %arg1 : i32
    %c16_i32 = arith.constant 16 : i32
    %17 = arith.muli %16, %c16_i32 : i32
    %18 = tpu.iota {dimensions = array<i32: 0>} : vector<16x1xi32>
    %19 = vector.broadcast %17 : i32 to vector<16x1xi32>
    %20 = arith.addi %19, %18 : vector<16x1xi32>
    %c16_i32_4 = arith.constant 16 : i32
    %21 = vector.broadcast %c16_i32_4 : i32 to vector<16x1xi32>
    %22 = arith.cmpi slt, %20, %21 : vector<16x1xi32>
    %cst_5 = arith.constant 0.000000e+00 : f32
    %23 = vector.broadcast %cst_5 : f32 to vector<16x1xf32>
    %24 = arith.select %22, %14, %23 : vector<16x1xi1>, vector<16x1xf32>
    %25 = vector.shape_cast %24 : vector<16x1xf32> to vector<16x1xf32>
    %26 = vector.broadcast %25 : vector<16x1xf32> to vector<16x128xf32>
    %c0_6 = arith.constant 0 : index
    %c0_7 = arith.constant 0 : index
    %27 = vector.load %arg4[%c0_6, %c0_7] : memref<8x128xf32, #tpu.memory_space<vmem>>, vector<8x128xf32>
    %28 = vector.shape_cast %26 : vector<16x128xf32> to vector<2x8x128xf32>
    %cst_8 = arith.constant dense<0.000000e+00> : vector<8x128xf32>
    %29 = vector.multi_reduction <add>, %28, %cst_8 [0] : vector<2x8x128xf32> to vector<8x128xf32>
    %30 = arith.addf %27, %29 : vector<8x128xf32>
    %c0_9 = arith.constant 0 : index
    %c0_10 = arith.constant 0 : index
    %31 = vector.load %arg4[%c0_9, %c0_10] : memref<8x128xf32, #tpu.memory_space<vmem>>, vector<8x128xf32>
    tpu.vector_store %arg4[%c0_9, %c0_10], %30 {strides = array<i32>} : memref<8x128xf32, #tpu.memory_space<vmem>>, vector<8x128xf32>,
    %c0_i32_11 = arith.constant 0 : i32
    %32 = arith.cmpi eq, %arg1, %c0_i32_11 : i32
    %33 = arith.extui %32 : i1 to i32
    %c0_i32_12 = arith.constant 0 : i32
    %34 = arith.cmpi ne, %33, %c0_i32_12 : i32
    scf.if %34 {
      %c0_13 = arith.constant 0 : index
      %c0_14 = arith.constant 0 : index
      %35 = vector.load %arg4[%c0_13, %c0_14] : memref<8x128xf32, #tpu.memory_space<vmem>>, vector<8x128xf32>
      %cst_15 = arith.constant dense<0.000000e+00> : vector<128xf32>
      %36 = vector.multi_reduction <add>, %35, %cst_15 [0] : vector<8x128xf32> to vector<128xf32>
      %37 = vector.shape_cast %36 : vector<128xf32> to vector<1x128xf32>
      %38 = vector.shape_cast %37 : vector<1x128xf32> to vector<1x1x128xf32>
      %39 = vector.shape_cast %38 : vector<1x1x128xf32> to vector<1x1x128xf32>
      %40 = vector.broadcast %39 : vector<1x1x128xf32> to vector<1x8x128xf32>
      %c0_16 = arith.constant 0 : index
      %c0_17 = arith.constant 0 : index
      %c0_18 = arith.constant 0 : index
      %41 = vector.load %arg3[%c0_16, %c0_17, %c0_18] : memref<1x8x128xf32, #tpu.memory_space<vmem>>, vector<1x8x128xf32>
      tpu.vector_store %arg3[%c0_16, %c0_17, %c0_18], %40 {strides = array<i32>} : memref<1x8x128xf32, #tpu.memory_space<vmem>>, vector<1x8x128xf32>,
    } else {
    }
    return
  }
  func.func @transform_0(%arg0: i32, %arg1: i32) -> (i32, i32) {
    %c1_i32 = arith.constant 1 : i32
    %0 = arith.muli %arg0, %c1_i32 : i32
    %1 = arith.addi %0, %arg1 : i32
    %c0_i32 = arith.constant 0 : i32
    %c0_i32_0 = arith.constant 0 : i32
    return %1, %c0_i32 : i32, i32
  }
  func.func @transform_1(%arg0: i32, %arg1: i32) -> (i32, i32, i32) {
    %c0_i32 = arith.constant 0 : i32
    %c0_i32_0 = arith.constant 0 : i32
    %c0_i32_1 = arith.constant 0 : i32
    return %arg0, %c0_i32, %c0_i32_0 : i32, i32, i32
  }
}

</mosaic_0001>

<bundles_post_ra>
// kernel: tpu_custom_call.1
= control target key start
LH: loop header
LB: loop body
LE: loop exit
PB: predicated region body
PF: predicated region fallthrough
CT: control target
= control target key end

     0   :  { %6 = vsyncpa [#allocation4], 0  ;;  %s321_s0 = inlined_call_operand.hbm [shape: f32[16,32], index: 0, kind: input, shape index: {}]   ;;  %s322_s1 = inlined_call_operand.hbm [shape: f32[1,8,128], index: 1, kind: output, shape index: {}]  }
   0x1   :  { %7 = vsyncpa [#allocation5], 0  ;;  %s277_s6 = smov [#allocation3]   ;;  %s229_s10 = scalar_lea.hbm %s321_s0, 256 }
   0x2   :  { %s17_s7 = sshll.u32 %s277_s6, 4  ;;  %p230_p0 = scmp.ne.s32.totalorder %s321_s0, %s229_s10  ;;  %s18_s7 = int_to_ptr.vmem [resolvable:$true] %s17_s7 }
   0x3   :  { %p233_p1 = scmp.lt.u32.totalorder %s229_s10, %s321_s0 }
   0x5   :  { %p235_p2 = pnand %p233_p1, %p230_p0 }
   0x7   :  { %238 = shalt.err (!%p235_p2)
}
   0x8   :  { %s239_s15 = scalar_lea.vmem %s18_s7, 256  ;;  %p244_p4 = scmp.lt.s32.totalorder %s18_s7, %s18_s7 }
   0x9   :  { %p240_p3 = scmp.ne.s32.totalorder %s18_s7, %s239_s15  ;;  %p245_p5 = scmp.lt.s32.totalorder %s239_s15, %s239_s15 }
   0xb   :  { %p246_p6 = por %p245_p5, %p244_p4 }
   0xd   :  { %p247_p7 = pnand %p246_p6, %p240_p3 }
   0xf   :  { %250 = shalt.err (!%p247_p7)
}
  0x10   :  { %s278_s16 = smov 128   ;;  %s279_s17 = smov 8  }
  0x11   :  { %23 = dma.hbm_to_vmem [thread:$0]  %s321_s0, 256, %s18_s7, [#allocation4], %s278_s16, %s278_s16, %s279_s17  }
  0x12   :  { %273 = dma.done.wait [#allocation4], 256  }
  0x13   :  { %274 = vsyncadd [#allocation4], 4294967040  ;;  %vm36_vm0 = vcmask 261120   ;;  %v34_v0 = vld [vmem:[#allocation3] sm:$0xff]  ;;  %v35_v1 = vld [vmem:[#allocation3 + $0x8] sm:$0xff]  ;;  %v281_v13 = vmov 0  }
  0x14   :  { %v37_v2 = vsel %vm36_vm0, %v34_v0, -inf  ;;  %v40_v3 = vsel %vm36_vm0, %v35_v1, -inf  ;;  %v280_v4 = vmov 1.0|1.0   ;;  %219 = vset.pattern.permute.xlu1 %v281_v13  ;;  %220 = vset.pattern.permute.xlu0 %v281_v13  ;;  %s282_s0 = smov [#allocation6]  }
  0x15   :  { %38 = vmax.xlane.f32.xlu0 %v37_v2  ;;  %209 = vmatprep.subr.bf16.mxu0 %v280_v4  ;;  %s181_s20 = sshll.u32 %s282_s0, 4  ;;  %s182_s20 = int_to_ptr.vmem [resolvable:$true] %s181_s20 }
  0x16   :  { %210 = vmatpush3.bf16.msra.mxu0 %v280_v4  ;;  %s251_s21 = scalar_lea.vmem %s182_s20, 128  ;;  %p256_p9 = scmp.lt.s32.totalorder %s182_s20, %s182_s20 }
  0x17   :  { %211 = vmatprep.subr.bf16.mxu0 %v280_v4  ;;  %p252_p8 = scmp.ne.s32.totalorder %s182_s20, %s251_s21  ;;  %p257_p10 = scmp.lt.s32.totalorder %s251_s21, %s251_s21 }
  0x19   :  { %41 = vmax.xlane.f32.xlu0 %v40_v3  ;;  %p258_p11 = por %p257_p10, %p256_p9 }
  0x1a   :  { %212 = vmatpush3.bf16.msra.mxu0 %v280_v4 }
  0x1b   :  { %p259_p12 = pnand %p258_p11, %p252_p8 }
  0xa2   :  { %v39_v5 = vpop.xlane.xlu0 %38 }
  0xa3   :  { %v43_v6 = vsub.f32 %v34_v0, %v39_v5 }
  0xa5   :  { %v45_v7 = vmul.f32 1.442695, %v43_v6 }
  0xa6   :  { %v42_v8 = vpop.xlane.xlu0 %41 }
  0xa7   :  { %221 = vpow2.f32 %v45_v7  ;;  %v44_v9 = vsub.f32 %v35_v1, %v42_v8 }
  0xa9   :  { %v47_v10 = vmul.f32 1.442695, %v44_v9 }
  0xab   :  { %223 = vpow2.f32 %v47_v10 }
  0xb1   :  { %v222_v11 = vpop.eup %221 }
  0xb2   :  { %206 = vmatprep.mubr.msk.f32.mxu0 %vm36_vm0, %v222_v11 }
  0xb5   :  { %v224_v12 = vpop.eup %223 }
  0xb6   :  { %207 = vmatmul.mubr.msk.f32.vlgmr.msra.gmra.mrb[0].mxu0 %vm36_vm0, %v224_v12 }
 0x189   :  { %v208_v14 = vpop.f32.mrb[0].mxu0 }
 0x18a   :  { %225 = vlog2.f32 %v208_v14  ;;  %v121_v15 = vpop.f32.mrb[1].mxu0 }
 0x18b   :  { %227 = vlog2.f32 %v121_v15 }
 0x194   :  { %v226_v16 = vpop.eup %225 }
 0x195   :  { %v228_v17 = vpop.eup %227  ;;  %v133_v18 = vmul.f32 0.6931472, %v226_v16 }
 0x196   :  { %v131_v19 = vmul.f32 0.6931472, %v228_v17 }
 0x197   :  { %v135_v21 = vadd.f32 %v133_v18, %v42_v8 }
 0x198   :  { %v134_v20 = vadd.f32 %v131_v19, %v39_v5 }
 0x199   :  { %v137_v23 = vsub.f32 %v135_v21, %v35_v1 }
 0x19a   :  { %v136_v22 = vsub.f32 %v134_v20, %v34_v0 }
 0x19c   :  { %152 = vperm.xlu1 %219, %v136_v22  }
 0x1a0   :  { %157 = vperm.xlu1 %219, %v137_v23  }
 0x21b   :  { %v153_v24 = vpop.permute.xlu1 %152 }
 0x21f   :  { %v158_v25 = vpop.permute.xlu1 %157 }
 0x220   :  { %v161_v26 = vadd.f32 %v158_v25, %v153_v24 }
 0x222   :  { %v168_v27 = vrot.slane %v161_v26, 4 }
 0x224   :  { %v169_v28 = vadd.f32 %v168_v27, %v161_v26 }
 0x226   :  { %v170_v29 = vrot.slane %v169_v28, 2 }
 0x228   :  { %v171_v30 = vadd.f32 %v170_v29, %v169_v28 }
 0x22a   :  { %v172_v31 = vrot.slane %v171_v30, 1 }
 0x22c   :  { %v173_v32 = vadd.f32 %v172_v31, %v171_v30 }
 0x22e   :  { %174 = vst [vmem:[#allocation6] sm:$0xff] %v173_v32 }
 0x22f   :  { %262 = shalt.err (!%p259_p12)
}
 0x230   :  { %s263_s24 = scalar_lea.hbm %s322_s1, 128 }
 0x231   :  { %p264_p13 = scmp.ne.s32.totalorder %s322_s1, %s263_s24  ;;  %p267_p0 = scmp.lt.u32.totalorder %s263_s24, %s322_s1 }
 0x233   :  { %p269_p1 = pnand %p267_p0, %p264_p13 }
 0x235   :  { %272 = shalt.err (!%p269_p1)
}
 0x236   :  { %184 = dma.vmem_to_hbm [thread:$0]  %s182_s20, 128, %s322_s1, [#allocation5]  }
 0x237   :  { %275 = dma.done.wait [#allocation5], 128  }
 0x238   :  { %276 = vsyncadd [#allocation5], 4294967168 }
 0x239   :  { %188 = vsyncpa [#allocation4], 1 }
 0x23a   :  { %189 = vsyncpa [#allocation5], 1 }

</bundles_post_ra>
